<compile_context>
chip_gen: v5e
topology: v5e:2x2
jax: 0.10.0
libtpu: 0.0.40
codegen_flags: <defaults>
</compile_context>

<pallas_src>
import jax
import jax.numpy as jnp
from jax.experimental import pallas as pl
from jax.experimental.pallas import tpu as pltpu


_LANE = 128
_MIN_STEP_BYTES = 512 << 10      # don't split into >=2 grid steps below this per-step block
_FUSED_BLOCK_TARGET = 16 << 20   # per-step (Bblk, C, S) input-slab target (amortize step cost)
_STREAM_TILE_TARGET = 8 << 20    # per-step (C, TS) input-tile target (~0.35us/step overhead)


def _round_down(x, m):
    return (x // m) * m


def _largest_divisor_leq(n, cap):
    cap = max(1, min(n, cap))
    for d in range(cap, 0, -1):
        if n % d == 0:
            return d
    return 1


def _tpu_vmem_capacity():
    """Physical VMEM bytes per core, or None if it can't be queried."""
    try:
        return int(pltpu.get_tpu_info().vmem_capacity_bytes)
    except Exception:
        return None


def _budgets():
    cap = _tpu_vmem_capacity()
    known = cap is not None
    if cap is None:
        cap = 64 << 20                      # conservative fallback: v7x-sized part
    budget = (3 * cap) // 4                 # working-set budget for block sizing
    limit_cap = cap - (8 << 20)             # never request all of physical VMEM (headroom)
    two_tc = known and cap <= (64 << 20)    # 64 MiB VMEM part => v7x-like, 2 TensorCores
    return budget, limit_cap, two_tc


def _vmem_limit(need_bytes, limit_cap):
    # Above the v5e/v6e scoped defaults (16/32 MiB) when big blocks need it, always capped
    # 8 MiB below physical VMEM (compiler scratch / semaphores / resident weights).
    return int(min(limit_cap, max(need_bytes + (2 << 20), 32 << 20)))


def _sca3d_fused_kernel(x_ref, w1t_ref, b1_ref, w2t_ref, b2_ref, wsp_ref, out_ref):
    f32 = jnp.float32
    x = x_ref[...]                                   # (Bblk, C, S), native dtype
    wsp = wsp_ref[...][None, :, :]                   # (1, C, 1) f32

    # Channel gate: AdaptiveAvgPool3d(1) -> Linear -> ReLU -> Linear -> sigmoid (f32 math).
    pooled = jnp.mean(x, axis=-1, dtype=f32)                                  # (Bblk, C)
    h = jnp.dot(pooled, w1t_ref[...], preferred_element_type=f32) + b1_ref[...]
    h = jnp.maximum(h, 0.0)                                                   # (Bblk, Hid)
    chn = jax.nn.sigmoid(jnp.dot(h, w2t_ref[...], preferred_element_type=f32) + b2_ref[...])

    # Spatial gate: Conv3d(C, 1, 1, bias=False) == sum_c wsp[c] * x[:, c, :]
    # (VPU broadcast-multiply + cross-sublane reduce; keeps the MXU off the critical path).
    if x.dtype == jnp.float32:
        spa = jax.nn.sigmoid(jnp.sum(x * wsp, axis=1, keepdims=True))         # (Bblk, 1, S)
        out_ref[...] = (x * (1.0 + chn[:, :, None] + spa)).astype(out_ref.dtype)
    else:
        # Narrow activations (e.g. bf16): keep the full-slab gate apply in the narrow dtype,
        # halving the live VMEM footprint; gate math stays f32-accumulated.
        spa = jax.nn.sigmoid(
            jnp.sum(x * wsp.astype(x.dtype), axis=1, keepdims=True, dtype=f32))
        gate = 1.0 + chn[:, :, None].astype(x.dtype) + spa.astype(x.dtype)
        out_ref[...] = (x * gate).astype(out_ref.dtype)


def _sca3d_stream_kernel(x_ref, chn_ref, wsp_ref, out_ref):
    f32 = jnp.float32
    x = x_ref[...]                                   # (C, TS), native dtype
    chn = chn_ref[...]                               # (C, 1) f32
    wsp = wsp_ref[...]                               # (C, 1) f32
    if x.dtype == jnp.float32:
        spa = jax.nn.sigmoid(jnp.sum(x * wsp, axis=0, keepdims=True))         # (1, TS)
        out_ref[...] = (x * (1.0 + chn + spa)).astype(out_ref.dtype)
    else:
        spa = jax.nn.sigmoid(
            jnp.sum(x * wsp.astype(x.dtype), axis=0, keepdims=True, dtype=f32))
        gate = 1.0 + chn.astype(x.dtype) + spa.astype(x.dtype)
        out_ref[...] = (x * gate).astype(out_ref.dtype)


def sca3d_pallas(x, w1, b1, w2, b2, wsp, *, force_streaming=False, donate_x=False,
                 stream_tile=None):
    """SCA3D forward.

    x:   (B, C, D, H, W) activations (f32 or bf16; DMA'd in its own dtype).
    w1:  (Hid, C)  Linear(C, C//r).weight     b1: (Hid,) bias
    w2:  (C, Hid)  Linear(C//r, C).weight     b2: (C,)   bias
    wsp: (1, C)    Conv3d(C, 1, 1, bias=False).weight (kernel dims squeezed)
    donate_x: set True only if the caller actually donates x (jit donate_argnums);
              then the output aliases x's HBM buffer.
    """
    b, c, d, h, w = x.shape
    s = d * h * w
    x3 = x.reshape(b, c, s)
    itemsize = x.dtype.itemsize

    # Parameters as f32, laid out for batched right-multiplication.
    w1t = jnp.asarray(w1, jnp.float32).T                   # (C, Hid)
    b1r = jnp.asarray(b1, jnp.float32).reshape(1, -1)      # (1, Hid)
    w2t = jnp.asarray(w2, jnp.float32).T                   # (Hid, C)
    b2r = jnp.asarray(b2, jnp.float32).reshape(1, -1)      # (1, C)
    wsp_col = jnp.asarray(wsp, jnp.float32).reshape(c, 1)  # (C, 1)
    hid = w1t.shape[1]

    budget, limit_cap, two_tc = _budgets()

    # Honest per-element working set: double-buffered in + out blocks in the input dtype,
    # plus ~3 full-slab temporaries inside the kernel (f32 for f32 inputs, mixed for bf16).
    work_per_elem = 4 * itemsize + 12
    per_b_work = c * s * work_per_elem                     # one batch element, working set
    per_b_io = c * s * itemsize                            # one batch element, input bytes

    fits_fused = per_b_work <= budget
    # Degenerate 1-step fused grid on a 2-TensorCore (v7x-like) part would idle one core;
    # the streaming path (grid over S tiles) keeps both busy despite its extra pooled read.
    if two_tc and b == 1 and per_b_io >= (8 << 20):
        fits_fused = False

    aliases = {0: 0} if donate_x else {}

    if fits_fused and not force_streaming:
        # ------------------ fused single-pass path ------------------
        bblk = min(b,
                   max(1, budget // per_b_work),
                   max(1, _FUSED_BLOCK_TARGET // per_b_io))
        bblk = _largest_divisor_leq(b, bblk)               # bblk divides b: no pad copy of x
        if (two_tc and b >= 2 and bblk >= b
                and (b // 2) * per_b_io >= _MIN_STEP_BYTES):
            bblk = _largest_divisor_leq(b, b // 2)         # keep >=2 steps for 2 TensorCores

        out = pl.pallas_call(
            _sca3d_fused_kernel,
            out_shape=jax.ShapeDtypeStruct((b, c, s), x.dtype),
            grid_spec=pltpu.PrefetchScalarGridSpec(
                num_scalar_prefetch=0,
                grid=(b // bblk,),
                in_specs=[
                    pl.BlockSpec((bblk, c, s), lambda i: (i, 0, 0)),   # x slab
                    pl.BlockSpec((c, hid), lambda i: (0, 0)),          # W1^T
                    pl.BlockSpec((1, hid), lambda i: (0, 0)),          # b1
                    pl.BlockSpec((hid, c), lambda i: (0, 0)),          # W2^T
                    pl.BlockSpec((1, c), lambda i: (0, 0)),            # b2
                    pl.BlockSpec((c, 1), lambda i: (0, 0)),            # spatial conv weight
                ],
                out_specs=pl.BlockSpec((bblk, c, s), lambda i: (i, 0, 0)),
            ),
            compiler_params=pltpu.CompilerParams(
                dimension_semantics=("parallel",),
                vmem_limit_bytes=_vmem_limit(bblk * per_b_work, limit_cap),
            ),
            input_output_aliases=aliases,
        )(x3, w1t, b1r, w2t, b2r, wsp_col)
        return out.reshape(b, c, d, h, w)

    # ------------------ streaming tiled-S path (large volumes) ------------------
    # Channel gate needs all of S, so precompute it outside the streaming kernel
    # (one extra HBM read of x, only on this fallback path; f32 accumulation, no f32 copy).
    pooled = jnp.mean(x3, axis=-1, dtype=jnp.float32)                   # (B, C)
    hdn = jax.nn.relu(pooled @ w1t + b1r)                               # (B, Hid)
    chn = jax.nn.sigmoid(hdn @ w2t + b2r)                               # (B, C)
    chn3 = chn[:, :, None]                                              # (B, C, 1) f32

    # Lane-dense spatial tile: multiple of 128, ~8 MiB input, within the VMEM budget.
    col_work = c * work_per_elem
    if stream_tile is not None:                                         # test-only override
        ts = max(_LANE, _round_down(int(stream_tile), _LANE))
    else:
        ts = min(max(_LANE, _STREAM_TILE_TARGET // (c * itemsize)),
                 max(_LANE, budget // col_work))
        ts = max(_LANE, _round_down(ts, _LANE))
    if ts >= s:
        ts = s                      # single full-extent tile (full dims always legal)
    n_s = pl.cdiv(s, ts)            # ragged last tile: Pallas masked partial block (no pad)

    out = pl.pallas_call(
        _sca3d_stream_kernel,
        out_shape=jax.ShapeDtypeStruct((b, c, s), x.dtype),
        grid_spec=pltpu.PrefetchScalarGridSpec(
            num_scalar_prefetch=0,
            grid=(b, n_s),
            in_specs=[
                pl.BlockSpec((pl.Squeezed(), c, ts), lambda bi, si: (bi, 0, si)),  # x tile
                pl.BlockSpec((pl.Squeezed(), c, 1), lambda bi, si: (bi, 0, 0)),    # chn gate
                pl.BlockSpec((c, 1), lambda bi, si: (0, 0)),                       # wsp
            ],
            out_specs=pl.BlockSpec((pl.Squeezed(), c, ts), lambda bi, si: (bi, 0, si)),
        ),
        compiler_params=pltpu.CompilerParams(
            dimension_semantics=("parallel", "parallel"),
            vmem_limit_bytes=_vmem_limit(ts * col_work, limit_cap),
        ),
        input_output_aliases=aliases,
    )(x3, chn3, wsp_col)
    return out.reshape(b, c, d, h, w)


def sca3d_ref(x, w1, b1, w2, b2, wsp):
    """Pure-JAX reference mirroring the PyTorch SCA3D.forward."""
    pooled = x.mean(axis=(2, 3, 4))                                     # (B, C)
    hdn = jax.nn.relu(pooled @ w1.T + b1.reshape(-1))                   # (B, Hid)
    chn = jax.nn.sigmoid(hdn @ w2.T + b2.reshape(-1))                   # (B, C)
    chn = chn[:, :, None, None, None]
    spa = jax.nn.sigmoid(jnp.einsum('oc,bcdhw->bodhw', wsp, x))         # (B, 1, D, H, W)
    return x + x * chn + x * spa


if __name__ == "__main__":
    # Smallest decoder stage of AttentionUNet(f_maps=16): channels = 32 + 16 = 48, reduction=16.
    B, C, D, H, W = 2, 48, 8, 8, 8
    RED = 16
    HID = C // RED

    key = jax.random.PRNGKey(0)
    kx, k1, k2, k3, k4, k5 = jax.random.split(key, 6)

    x = jax.random.normal(kx, (B, C, D, H, W), dtype=jnp.float32)
    w1 = 0.2 * jax.random.normal(k1, (HID, C), dtype=jnp.float32)   # Linear(C, C//r).weight
    b1 = 0.1 * jax.random.normal(k2, (HID,), dtype=jnp.float32)     # Linear(C, C//r).bias
    w2 = 0.2 * jax.random.normal(k3, (C, HID), dtype=jnp.float32)   # Linear(C//r, C).weight
    b2 = 0.1 * jax.random.normal(k4, (C,), dtype=jnp.float32)       # Linear(C//r, C).bias
    wsp = 0.2 * jax.random.normal(k5, (1, C), dtype=jnp.float32)    # Conv3d(C,1,1,bias=False)

    ref = sca3d_ref(x, w1, b1, w2, b2, wsp)

    # Fused single-pass path (auto-selected at this size).
    out_fused = jax.block_until_ready(sca3d_pallas(x, w1, b1, w2, b2, wsp))
    assert out_fused.shape == (B, C, D, H, W)
    assert jnp.allclose(out_fused, ref, atol=1e-4, rtol=1e-4), "fused path mismatch"

    # Streaming tiled-S path (forced), S = 512 (one full tile per batch element).
    out_stream = jax.block_until_ready(
        sca3d_pallas(x, w1, b1, w2, b2, wsp, force_streaming=True))
    assert jnp.allclose(out_stream, ref, atol=1e-4, rtol=1e-4), "streaming path mismatch"

    # Ragged S (5*6*7 = 210, not a 128-multiple) with a forced 128-lane tile: exercises the
    # masked partial last block — no jnp.pad copies anywhere.
    x_odd = jax.random.normal(kx, (B, C, 5, 6, 7), dtype=jnp.float32)
    ref_odd = sca3d_ref(x_odd, w1, b1, w2, b2, wsp)
    out_odd = jax.block_until_ready(
        sca3d_pallas(x_odd, w1, b1, w2, b2, wsp, force_streaming=True, stream_tile=128))
    assert jnp.allclose(out_odd, ref_odd, atol=1e-4, rtol=1e-4), "ragged streaming mismatch"

    # bf16 activations: gates computed with f32 accumulation, full-slab apply kept in bf16.
    x_bf = x.astype(jnp.bfloat16)
    ref_bf = sca3d_ref(x_bf.astype(jnp.float32), w1, b1, w2, b2, wsp)
    out_bf = jax.block_until_ready(sca3d_pallas(x_bf, w1, b1, w2, b2, wsp))
    assert jnp.allclose(out_bf.astype(jnp.float32), ref_bf, atol=5e-2, rtol=5e-2), \
        "bf16 fused mismatch"

    # Donated call: input_output_aliases only requested when x is actually donated.
    fused_donated = jax.jit(
        lambda xx: sca3d_pallas(xx, w1, b1, w2, b2, wsp, donate_x=True), donate_argnums=0)
    out_don = jax.block_until_ready(fused_donated(x * 1.0))
    assert jnp.allclose(out_don, ref, atol=1e-4, rtol=1e-4), "donated fused mismatch"

    print("KERNEL_OK")
</pallas_src>

<mosaic_0001>
module attributes {stable_mosaic.version = 11 : i64} {
  func.func @_sca3d_fused_kernel(%arg0: i32, %arg1: memref<2x48x512xf32, #tpu.memory_space<vmem>>, %arg2: memref<48x3xf32, #tpu.memory_space<vmem>>, %arg3: memref<1x3xf32, #tpu.memory_space<vmem>>, %arg4: memref<3x48xf32, #tpu.memory_space<vmem>>, %arg5: memref<1x48xf32, #tpu.memory_space<vmem>>, %arg6: memref<48x1xf32, #tpu.memory_space<vmem>>, %arg7: memref<2x48x512xf32, #tpu.memory_space<vmem>>) attributes {dimension_semantics = [#tpu.dimension_semantics<parallel>], iteration_bounds = array<i64: 1>, scalar_prefetch = 0 : i64, scratch_operands = 0 : i64, tpu.core_type = #tpu.core_type<tc>, window_params = [{transform_indices = @transform_0, window_bounds = array<i64: 2, 48, 512>}, {pipeline_mode = #tpu.pipeline_mode<synchronous>, transform_indices = @transform_1, window_bounds = array<i64: 48, 3>}, {pipeline_mode = #tpu.pipeline_mode<synchronous>, transform_indices = @transform_2, window_bounds = array<i64: 1, 3>}, {pipeline_mode = #tpu.pipeline_mode<synchronous>, transform_indices = @transform_3, window_bounds = array<i64: 3, 48>}, {pipeline_mode = #tpu.pipeline_mode<synchronous>, transform_indices = @transform_4, window_bounds = array<i64: 1, 48>}, {pipeline_mode = #tpu.pipeline_mode<synchronous>, transform_indices = @transform_5, window_bounds = array<i64: 48, 1>}, {transform_indices = @transform_6, window_bounds = array<i64: 2, 48, 512>}]} {
    %c0 = arith.constant 0 : index
    %c0_0 = arith.constant 0 : index
    %c0_1 = arith.constant 0 : index
    %0 = vector.load %arg1[%c0, %c0_0, %c0_1] : memref<2x48x512xf32, #tpu.memory_space<vmem>>, vector<2x48x512xf32>
    %c0_2 = arith.constant 0 : index
    %c0_3 = arith.constant 0 : index
    %1 = vector.load %arg6[%c0_2, %c0_3] : memref<48x1xf32, #tpu.memory_space<vmem>>, vector<48x1xf32>
    %2 = vector.shape_cast %1 : vector<48x1xf32> to vector<1x48x1xf32>
    %cst = arith.constant dense<0.000000e+00> : vector<2x48xf32>
    %3 = vector.multi_reduction <add>, %0, %cst [2] : vector<2x48x512xf32> to vector<2x48xf32>
    %cst_4 = arith.constant 5.120000e+02 : f32
    %4 = vector.broadcast %cst_4 : f32 to vector<2x48xf32>
    %5 = arith.divf %3, %4 : vector<2x48xf32>
    %c0_5 = arith.constant 0 : index
    %c0_6 = arith.constant 0 : index
    %6 = vector.load %arg2[%c0_5, %c0_6] : memref<48x3xf32, #tpu.memory_space<vmem>>, vector<48x3xf32>
    %cst_7 = arith.constant dense<0.000000e+00> : vector<2x3xf32>
    %7 = tpu.matmul %5, %6, %cst_7 {dimension_numbers = #tpu.dot_dimension_numbers<[1], [0], [0], [1], [0, 0, 1, 1], [], []>} : vector<2x48xf32>, vector<48x3xf32>, vector<2x3xf32> -> vector<2x3xf32>
    %c0_8 = arith.constant 0 : index
    %c0_9 = arith.constant 0 : index
    %8 = vector.load %arg3[%c0_8, %c0_9] : memref<1x3xf32, #tpu.memory_space<vmem>>, vector<1x3xf32>
    %9 = vector.broadcast %8 : vector<1x3xf32> to vector<2x3xf32>
    %10 = arith.addf %7, %9 : vector<2x3xf32>
    %cst_10 = arith.constant 0.000000e+00 : f32
    %11 = vector.broadcast %cst_10 : f32 to vector<2x3xf32>
    %12 = arith.maximumf %10, %11 : vector<2x3xf32>
    %c0_11 = arith.constant 0 : index
    %c0_12 = arith.constant 0 : index
    %13 = vector.load %arg4[%c0_11, %c0_12] : memref<3x48xf32, #tpu.memory_space<vmem>>, vector<3x48xf32>
    %cst_13 = arith.constant dense<0.000000e+00> : vector<2x48xf32>
    %14 = tpu.matmul %12, %13, %cst_13 {dimension_numbers = #tpu.dot_dimension_numbers<[1], [0], [0], [1], [0, 0, 1, 1], [], []>} : vector<2x3xf32>, vector<3x48xf32>, vector<2x48xf32> -> vector<2x48xf32>
    %c0_14 = arith.constant 0 : index
    %c0_15 = arith.constant 0 : index
    %15 = vector.load %arg5[%c0_14, %c0_15] : memref<1x48xf32, #tpu.memory_space<vmem>>, vector<1x48xf32>
    %16 = vector.broadcast %15 : vector<1x48xf32> to vector<2x48xf32>
    %17 = arith.addf %14, %16 : vector<2x48xf32>
    %18 = arith.negf %17 : vector<2x48xf32>
    %19 = math.exp %18 : vector<2x48xf32>
    %cst_16 = arith.constant 1.000000e+00 : f32
    %20 = vector.broadcast %cst_16 : f32 to vector<2x48xf32>
    %21 = arith.addf %20, %19 : vector<2x48xf32>
    %22 = arith.divf %20, %21 : vector<2x48xf32>
    %23 = vector.broadcast %2 : vector<1x48x1xf32> to vector<2x48x512xf32>
    %24 = arith.mulf %0, %23 : vector<2x48x512xf32>
    %cst_17 = arith.constant dense<0.000000e+00> : vector<2x512xf32>
    %25 = vector.multi_reduction <add>, %24, %cst_17 [1] : vector<2x48x512xf32> to vector<2x512xf32>
    %26 = vector.shape_cast %25 : vector<2x512xf32> to vector<2x1x512xf32>
    %27 = arith.negf %26 : vector<2x1x512xf32>
    %28 = math.exp %27 : vector<2x1x512xf32>
    %cst_18 = arith.constant 1.000000e+00 : f32
    %29 = vector.broadcast %cst_18 : f32 to vector<2x1x512xf32>
    %30 = arith.addf %29, %28 : vector<2x1x512xf32>
    %31 = arith.divf %29, %30 : vector<2x1x512xf32>
    %32 = vector.shape_cast %22 : vector<2x48xf32> to vector<2x48x1xf32>
    %cst_19 = arith.constant 1.000000e+00 : f32
    %33 = vector.broadcast %cst_19 : f32 to vector<2x48x1xf32>
    %34 = arith.addf %33, %32 : vector<2x48x1xf32>
    %35 = vector.broadcast %34 : vector<2x48x1xf32> to vector<2x48x512xf32>
    %36 = vector.broadcast %31 : vector<2x1x512xf32> to vector<2x48x512xf32>
    %37 = arith.addf %35, %36 : vector<2x48x512xf32>
    %38 = arith.mulf %0, %37 : vector<2x48x512xf32>
    %c0_20 = arith.constant 0 : index
    %c0_21 = arith.constant 0 : index
    %c0_22 = arith.constant 0 : index
    %39 = vector.load %arg7[%c0_20, %c0_21, %c0_22] : memref<2x48x512xf32, #tpu.memory_space<vmem>>, vector<2x48x512xf32>
    tpu.vector_store %arg7[%c0_20, %c0_21, %c0_22], %38 {strides = array<i32>} : memref<2x48x512xf32, #tpu.memory_space<vmem>>, vector<2x48x512xf32>,
    return
  }
  func.func @transform_0(%arg0: i32) -> (i32, i32, i32) {
    %c0_i32 = arith.constant 0 : i32
    %c0_i32_0 = arith.constant 0 : i32
    %c0_i32_1 = arith.constant 0 : i32
    return %arg0, %c0_i32, %c0_i32_0 : i32, i32, i32
  }
  func.func @transform_1(%arg0: i32) -> (i32, i32) {
    %c0_i32 = arith.constant 0 : i32
    %c0_i32_0 = arith.constant 0 : i32
    %c0_i32_1 = arith.constant 0 : i32
    return %c0_i32, %c0_i32_0 : i32, i32
  }
  func.func @transform_2(%arg0: i32) -> (i32, i32) {
    %c0_i32 = arith.constant 0 : i32
    %c0_i32_0 = arith.constant 0 : i32
    %c0_i32_1 = arith.constant 0 : i32
    return %c0_i32, %c0_i32_0 : i32, i32
  }
  func.func @transform_3(%arg0: i32) -> (i32, i32) {
    %c0_i32 = arith.constant 0 : i32
    %c0_i32_0 = arith.constant 0 : i32
    %c0_i32_1 = arith.constant 0 : i32
    return %c0_i32, %c0_i32_0 : i32, i32
  }
  func.func @transform_4(%arg0: i32) -> (i32, i32) {
    %c0_i32 = arith.constant 0 : i32
    %c0_i32_0 = arith.constant 0 : i32
    %c0_i32_1 = arith.constant 0 : i32
    return %c0_i32, %c0_i32_0 : i32, i32
  }
  func.func @transform_5(%arg0: i32) -> (i32, i32) {
    %c0_i32 = arith.constant 0 : i32
    %c0_i32_0 = arith.constant 0 : i32
    %c0_i32_1 = arith.constant 0 : i32
    return %c0_i32, %c0_i32_0 : i32, i32
  }
  func.func @transform_6(%arg0: i32) -> (i32, i32, i32) {
    %c0_i32 = arith.constant 0 : i32
    %c0_i32_0 = arith.constant 0 : i32
    %c0_i32_1 = arith.constant 0 : i32
    return %arg0, %c0_i32, %c0_i32_0 : i32, i32, i32
  }
}

</mosaic_0001>

<bundles_post_ra>
// kernel: tpu_custom_call.1
= control target key start
LH: loop header
LB: loop body
LE: loop exit
PB: predicated region body
PF: predicated region fallthrough
CT: control target
= control target key end

     0   :  { %11 = vsyncpa [#allocation3], 0  ;;  %s1711_s0 = inlined_call_operand.hbm [shape: f32[2,48,512], index: 0, kind: input, shape index: {}]   ;;  %s1712_s1 = inlined_call_operand.vmem [shape: f32[48,3], index: 1, kind: input, shape index: {}]   ;;  %s1713_s2 = inlined_call_operand.vmem [shape: f32[1,3], index: 2, kind: input, shape index: {}]   ;;  %s1714_s3 = inlined_call_operand.vmem [shape: f32[3,48], index: 3, kind: input, shape index: {}]   ;;  %s1715_s4 = inlined_call_operand.vmem [shape: f32[1,48], index: 4, kind: input, shape index: {}]   ;;  %s1716_s5 = inlined_call_operand.vmem [shape: f32[48,1], index: 5, kind: input, shape index: {}]   ;;  %s1717_s6 = inlined_call_operand.hbm [shape: f32[2,48,512], index: 6, kind: output, shape index: {}]  }
   0x1   :  { %12 = vsyncpa [#allocation4], 0  ;;  %s17_s23 = sshll.u32 %s1711_s0, 4  ;;  %s1039_s24 = smov [#allocation2]   ;;  %s18_s23 = int_to_ptr.hbm [resolvable:$true] %s17_s23 }
   0x2   :  { %s19_s25 = sshll.u32 %s1039_s24, 4  ;;  %s1040_s26 = smov 512   ;;  %s20_s25 = int_to_ptr.vmem [resolvable:$true] %s19_s25 }
   0x3   :  { %s1041_s27 = smov 32  }
   0x4   :  { %25 = dma.hbm_to_vmem [thread:$0]  %s18_s23, 6144, %s20_s25, [#allocation3], %s1040_s26, %s1040_s26, %s1041_s27  }
   0x5   :  { %1035 = dma.done.wait [#allocation3], 6144  }
   0x6   :  { %1036 = vsyncadd [#allocation3], 4294961152  ;;  %v1086_v0 = vld [vmem:[#allocation2 + $0xc0] sm:$0xff]  ;;  %v1088_v1 = vld [vmem:[#allocation2 + $0xc8] sm:$0xff]  ;;  %vm200_vm1 = vcmask 130112   ;;  %vm204_vm2 = vcmask 195712  }
   0x7   :  { %v1090_v2 = vld [vmem:[#allocation2 + $0xd0] sm:$0xff]  ;;  %v124_v3 = vadd.f32 %v1088_v1, %v1086_v0  ;;  %v1094_v4 = vld [vmem:[#allocation2] sm:$0xff]  ;;  %v1096_v5 = vld [vmem:[#allocation2 + $0x8] sm:$0xff]  ;;  %vm208_vm3 = vcmask 261312   ;;  %vm212_vm4 = vcmask 326912   ;;  %vm216_vm5 = vcmask 392512  }
   0x8   :  { %v1098_v6 = vld [vmem:[#allocation2 + $0xd8] sm:$0xff]  ;;  %v1100_v7 = vld [vmem:[#allocation2 + $0x10] sm:$0xff]  ;;  %v94_v8 = vadd.f32 %v1096_v5, %v1094_v4  ;;  %v1104_v9 = vld [vmem:[#allocation2 + $0x40] sm:$0xff]  ;;  %vm229_vm6 = vcmask 1041409   ;;  %vm231_vm7 = vcmask 392192   ;;  %vm264_vm8 = vcmask 1042432  }
   0x9   :  { %1734 = vst [vmem:[#allocation8_spill] sm:$0xff] %v1098_v6  ;;  %v125_v10 = vadd.f32 %v124_v3, %v1090_v2  ;;  %v1107_v11 = vld [vmem:[#allocation2 + $0x18] sm:$0xff]  ;;  %v1109_v12 = vld [vmem:[#allocation2 + $0x48] sm:$0xff]  ;;  %v1111_v13 = vld [vmem:[#allocation2 + $0x50] sm:$0xff]  ;;  %vm260_vm9 = vcmask 23552   ;;  %s861_s9 = sshll.u32 %s1717_s6, 4  ;;  %s862_s9 = int_to_ptr.hbm [resolvable:$true] %s861_s9 }
   0xa   :  { %v95_v14 = vadd.f32 %v94_v8, %v1100_v7  ;;  %v104_v15 = vadd.f32 %v1109_v12, %v1104_v9  ;;  %v1116_v16 = vld [vmem:[#allocation2 + $0xe0] sm:$0xff]  ;;  %v1118_v17 = vld [vmem:[#allocation2 + $0xe8] sm:$0xff]  ;;  %v1120_v18 = vld [vmem:[#allocation2 + $0xf0] sm:$0xff] }
   0xb   :  { %v126_v19 = vadd.f32 %v125_v10, %v1098_v6  ;;  %v1123_v20 = vld [vmem:[#allocation2 + $0x58] sm:$0xff]  ;;  %v129_v21 = vadd.f32 %v1118_v17, %v1116_v16  ;;  %v1127_v22 = vld [vmem:[#allocation2 + $0x20] sm:$0xff]  ;;  %v1129_v23 = vld [vmem:[#allocation2 + $0x28] sm:$0xff] }
   0xc   :  { %v96_v24 = vadd.f32 %v95_v14, %v1107_v11  ;;  %v105_v25 = vadd.f32 %v104_v15, %v1111_v13  ;;  %v1133_v26 = vld [vmem:[#allocation2 + $0x30] sm:$0xff]  ;;  %v99_v27 = vadd.f32 %v1129_v23, %v1127_v22  ;;  %v1137_v28 = vld [vmem:[#allocation2 + $0x100] sm:$0xff]  ;;  %v1140_v30 = vld [vmem:[#allocation2 + $0x108] sm:$0xff] }
   0xd   :  { %127 = vadd.xlane.f32.xlu1 %v126_v19  ;;  %v130_v29 = vadd.f32 %v129_v21, %v1120_v18  ;;  %v1142_v31 = vld [vmem:[#allocation2 + $0x110] sm:$0xff]  ;;  %v1145_v33 = vld [vmem:[#allocation2 + $0xf8] sm:$0xff]  ;;  %v134_v35 = vadd.f32 %v1140_v30, %v1137_v28  ;;  %v1150_v36 = vld [vmem:[#allocation2 + $0x120] sm:$0xff] }
   0xe   :  { %1735 = vst [vmem:[#allocation9_spill] sm:$0xff] %v1142_v31  ;;  %97 = vadd.xlane.f32.xlu0 %v96_v24  ;;  %v106_v32 = vadd.f32 %v105_v25, %v1123_v20  ;;  %v100_v34 = vadd.f32 %v99_v27, %v1133_v26  ;;  %v1152_v37 = vld [vmem:[#allocation2 + $0x128] sm:$0xff]  ;;  %v1154_v38 = vld [vmem:[#allocation2 + $0x38] sm:$0xff]  ;;  %v1156_v39 = vld [vmem:[#allocation2 + $0x60] sm:$0xff] }
   0xf   :  { %1736 = vst [vmem:[#allocation10_spill] sm:$0xff] %v1145_v33  ;;  %v1158_v40 = vld [vmem:[#allocation2 + $0x68] sm:$0xff]  ;;  %v135_v41 = vadd.f32 %v134_v35, %v1142_v31  ;;  %v131_v42 = vadd.f32 %v130_v29, %v1145_v33  ;;  %v1162_v43 = vld [vmem:[#allocation2 + $0x118] sm:$0xff]  ;;  %v139_v44 = vadd.f32 %v1152_v37, %v1150_v36  ;;  %v1166_v45 = vld [vmem:[#allocation2 + $0x80] sm:$0xff] }
  0x10   :  { %1737 = vst [vmem:[#allocation11_spill] sm:$0xff] %v1152_v37  ;;  %107 = vadd.xlane.f32.xlu2 %v106_v32  ;;  %v1168_v46 = vld [vmem:[#allocation2 + $0x88] sm:$0xff]  ;;  %v101_v47 = vadd.f32 %v100_v34, %v1154_v38  ;;  %v1171_v48 = vld [vmem:[#allocation2 + $0x130] sm:$0xff]  ;;  %v109_v49 = vadd.f32 %v1158_v40, %v1156_v39  ;;  %v1180_v53 = vld [vmem:[#allocation2 + $0x138] sm:$0xff] }
  0x11   :  { %1738 = vst [vmem:[#allocation12_spill] sm:$0xff] %v1162_v43  ;;  %v1175_v50 = vld [vmem:[#allocation2 + $0x70] sm:$0xff]  ;;  %v136_v51 = vadd.f32 %v135_v41, %v1162_v43  ;;  %v114_v52 = vadd.f32 %v1168_v46, %v1166_v45  ;;  %v140_v54 = vadd.f32 %v139_v44, %v1171_v48  ;;  %v1185_v56 = vld [vmem:[#allocation2 + $0xa0] sm:$0xff]  ;;  %v1188_v58 = vld [vmem:[#allocation2 + $0xa8] sm:$0xff] }
  0x12   :  { %1739 = vst [vmem:[#allocation13_spill] sm:$0xff] %v1171_v48  ;;  %v1183_v55 = vld [vmem:[#allocation2 + $0x90] sm:$0xff]  ;;  %v110_v57 = vadd.f32 %v109_v49, %v1175_v50  ;;  %v1190_v59 = vld [vmem:[#allocation2 + $0x78] sm:$0xff]  ;;  %v1192_v60 = vld [vmem:[#allocation2 + $0x140] sm:$0xff]  ;;  %v119_v8 = vadd.f32 %v1188_v58, %v1185_v56 }
  0x13   :  { %1740 = vst [vmem:[#allocation14_spill] sm:$0xff] %v1180_v53  ;;  %v1194_v61 = vld [vmem:[#allocation2 + $0x148] sm:$0xff]  ;;  %v115_v62 = vadd.f32 %v114_v52, %v1183_v55  ;;  %v141_v63 = vadd.f32 %v140_v54, %v1180_v53  ;;  %v1198_v3 = vld [vmem:[#allocation2 + $0x98] sm:$0xff]  ;;  %v1202_v10 = vld [vmem:[#allocation2 + $0x160] sm:$0xff]  ;;  %v1042_v52 = vmov 512.0  }
  0x14   :  { %1741 = vst [vmem:[#allocation15_spill] sm:$0xff] %v1192_v60  ;;  %v1204_v14 = vld [vmem:[#allocation2 + $0x168] sm:$0xff]  ;;  %v111_v15 = vadd.f32 %v110_v57, %v1190_v59  ;;  %v1207_v19 = vld [vmem:[#allocation2 + $0xb0] sm:$0xff]  ;;  %v144_v21 = vadd.f32 %v1194_v61, %v1192_v60  ;;  %v1219_v34 = vld [vmem:[#allocation2 + $0xb8] sm:$0xff]  ;;  %909 = vrcp.f32 %v1042_v52 }
  0x15   :  { %132 = vadd.xlane.f32.xlu1 %v131_v42  ;;  %1742 = vst [vmem:[#allocation16_spill] sm:$0xff] %v1194_v61  ;;  %v1211_v24 = vld [vmem:[#allocation2 + $0x150] sm:$0xff]  ;;  %v116_v25 = vadd.f32 %v115_v62, %v1198_v3  ;;  %v149_v27 = vadd.f32 %v1204_v14, %v1202_v10  ;;  %v120_v29 = vadd.f32 %v119_v8, %v1207_v19  ;;  %v1222_v41 = vld [vmem:[#allocation2 + $0x158] sm:$0xff]  ;;  %v178_v54 = vld [vmem:[%s1712_s1 + $0x28] sm:$0xff] }
  0x16   :  { %102 = vadd.xlane.f32.xlu0 %v101_v47  ;;  %1743 = vst [vmem:[#allocation17_spill] sm:$0xff] %v1202_v10  ;;  %v1217_v32 = vld [vmem:[#allocation2 + $0x170] sm:$0xff]  ;;  %v145_v35 = vadd.f32 %v144_v21, %v1211_v24  ;;  %v1226_v47 = vld [vmem:[#allocation2 + $0x178] sm:$0xff]  ;;  %v177_v57 = vld [vmem:[%s1712_s1 + $0x20] sm:$0xff]  ;;  %244 = vmatpush.msra.mxu0 %v178_v54 }
  0x17   :  { %1744 = vst [vmem:[#allocation18_spill] sm:$0xff] %v1204_v14  ;;  %v150_v42 = vadd.f32 %v149_v27, %v1217_v32  ;;  %v121_v44 = vadd.f32 %v120_v29, %v1219_v34  ;;  %v175_v8 = vld [vmem:[%s1712_s1 + $0x10] sm:$0xff]  ;;  %v174_v21 = vld [vmem:[%s1712_s1 + $0x8] sm:$0xff] }
  0x18   :  { %137 = vadd.xlane.f32.xlu2 %v136_v51  ;;  %1745 = vst [vmem:[#allocation19_spill] sm:$0xff] %v1211_v24  ;;  %v146_v49 = vadd.f32 %v145_v35, %v1222_v41  ;;  %245 = vmatpush.msra.mxu0 %v177_v57 }
  0x19   :  { %1746 = vst [vmem:[#allocation20_spill] sm:$0xff] %v1217_v32  ;;  %v151_v51 = vadd.f32 %v150_v42, %v1226_v47 }
  0x1a   :  { %1747 = vst [vmem:[#allocation21_spill] sm:$0xff] %v1222_v41  ;;  %v910_v62 = vpop.eup %909 }
  0x1b   :  { %1748 = vst [vmem:[#allocation22_spill] sm:$0xff] %v1226_v47  ;;  %vm159_vm0 = vweird.f32 %v910_v62 }
  0x1d   :  { %142 = vadd.xlane.f32.xlu1 %v141_v63  ;;  %v176_v63 = vld [vmem:[%s1712_s1 + $0x18] sm:$0xff] }
  0x1e   :  { %112 = vadd.xlane.f32.xlu0 %v111_v15  ;;  %246 = vmatpush.msra.mxu0 %v176_v63  ;;  %v155_v15 = vmul.f32 512.0, %v910_v62 }
  0x20   :  { %117 = vadd.xlane.f32.xlu2 %v116_v25  ;;  %247 = vmatpush.msra.mxu0 %v175_v8  ;;  %v173_v25 = vld [vmem:[%s1712_s1] sm:$0xff]  ;;  %v156_v29 = vsub.f32 1.0, %v155_v15 }
  0x22   :  { %248 = vmatpush.msra.mxu0 %v174_v21 }
  0x24   :  { %249 = vmatpush.msra.mxu0 %v173_v25 }
  0x25   :  { %122 = vadd.xlane.f32.xlu1 %v121_v44  ;;  %v157_v44 = vmul.f32 %v910_v62, %v156_v29 }
  0x26   :  { %147 = vadd.xlane.f32.xlu0 %v146_v49  ;;  %v1730_v49 = vlaneseq }
  0x27   :  { %v158_v52 = vadd.f32 %v910_v62, %v157_v44 }
  0x28   :  { %152 = vadd.xlane.f32.xlu2 %v151_v51  ;;  %v196_v63 = vand.u32 127, %v1730_v49 }
  0x29   :  { %v160_v8 = vsel %vm159_vm0, %v910_v62, %v158_v52 }
  0x2a   :  { %v198_v47 = vadd.s32 4294967288, %v196_v63  ;;  %v206_v25 = vadd.s32 4294967272, %v196_v63  ;;  %v202_v29 = vadd.s32 4294967280, %v196_v63  ;;  %v210_v49 = vadd.s32 4294967264, %v196_v63 }
  0x80   :  { %v128_v27 = vpop.xlane.xlu1 %127 }
  0x81   :  { %v98_v35 = vpop.xlane.xlu0 %97  ;;  %v167_v15 = vmul.f32 %v160_v8, %v128_v27  ;;  %v214_v27 = vadd.s32 4294967256, %v196_v63 }
  0x82   :  { %v161_v14 = vmul.f32 %v160_v8, %v98_v35 }
  0x83   :  { %v108_v42 = vpop.xlane.xlu2 %107  ;;  %v218_v52 = vperm.slane %v167_v15, %v196_v63 }
  0x84   :  { %v163_v10 = vmul.f32 %v160_v8, %v108_v42  ;;  %v197_v48 = vperm.slane %v161_v14, %v196_v63 }
  0x88   :  { %v133_v51 = vpop.xlane.xlu1 %132 }
  0x89   :  { %v103_v54 = vpop.xlane.xlu0 %102  ;;  %v168_v41 = vmul.f32 %v160_v8, %v133_v51  ;;  %v203_v51 = vperm.slane %v163_v10, %v202_v29 }
  0x8a   :  { %v162_v32 = vmul.f32 %v160_v8, %v103_v54 }
  0x8b   :  { %v138_v57 = vpop.xlane.xlu2 %137  ;;  %v219_v37 = vperm.slane %v168_v41, %v198_v47 }
  0x8c   :  { %v199_v61 = vperm.slane %v162_v32, %v198_v47  ;;  %v169_v43 = vmul.f32 %v160_v8, %v138_v57 }
  0x8d   :  { %v220_v32 = vsel %vm200_vm1, %v219_v37, %v218_v52  ;;  %v93_v52 = vld [vmem:[%s1716_s5 + $0x28] sm:$0xff] }
  0x8e   :  { %v201_v54 = vsel %vm200_vm1, %v199_v61, %v197_v48  ;;  %v221_v6 = vperm.slane %v169_v43, %v202_v29 }
  0x8f   :  { %v205_v42 = vsel %vm204_vm2, %v203_v51, %v201_v54  ;;  %v907_v54 = vld [vmem:[%s1713_s2] ss:$0 sm:$0xff] }
  0x90   :  { %v143_v21 = vpop.xlane.xlu1 %142 }
  0x91   :  { %v113_v24 = vpop.xlane.xlu0 %112  ;;  %v170_v60 = vmul.f32 %v160_v8, %v143_v21 }
  0x92   :  { %v164_v53 = vmul.f32 %v160_v8, %v113_v24 }
  0x93   :  { %v118_v44 = vpop.xlane.xlu2 %117  ;;  %v223_v33 = vperm.slane %v170_v60, %v206_v25 }
  0x94   :  { %v165_v62 = vmul.f32 %v160_v8, %v118_v44  ;;  %v207_v35 = vperm.slane %v164_v53, %v206_v25  ;;  %v222_v53 = vsel %vm204_vm2, %v221_v6, %v220_v32  ;;  %v255_v44 = vld [vmem:[%s1714_s3] sm:$0x7]  ;;  %v89_v6 = vld [vmem:[%s1716_s5 + $0x8] sm:$0xff]  ;;  %v1749_v32 = vlaneseq }
  0x95   :  { %v224_v37 = vsel %vm208_vm3, %v223_v33, %v222_v53  ;;  %875 = vmatpush.msk.msra.mxu1 %vm264_vm8, %v255_v44  ;;  %v1043_v33 = vmov 0  }
  0x96   :  { %v211_v31 = vperm.slane %v165_v62, %v210_v49  ;;  %v209_v47 = vsel %vm208_vm3, %v207_v35, %v205_v42  ;;  %893 = vset.pattern.permute.xlu1 %v1043_v33  ;;  %892 = vset.pattern.permute.xlu0 %v1043_v33  ;;  %v91_v62 = vld [vmem:[%s1716_s5 + $0x18] sm:$0xff] }
  0x97   :  { %314 = vperm.xlu1 %893, %v89_v6   ;;  %894 = vset.pattern.permute.xlu2 %v1043_v33 }
  0x98   :  { %v123_v24 = vpop.xlane.xlu1 %122  ;;  %v213_v43 = vsel %vm212_vm4, %v211_v31, %v209_v47  ;;  %v88_v31 = vld [vmem:[%s1716_s5] sm:$0xff] }
  0x99   :  { %v166_v14 = vmul.f32 %v160_v8, %v123_v24  ;;  %v148_v41 = vpop.xlane.xlu0 %147  ;;  %309 = vperm.xlu0 %892, %v88_v31   ;;  %v1278_v24 = vshrl.u32 %v1749_v32, 7 }
  0x9a   :  { %v171_v57 = vmul.f32 %v160_v8, %v148_v41  ;;  %v908_v41 = vld [vmem:[%s1715_s4] ss:$0 sm:$0xff]  ;;  %s1044_s4 = smov [#allocation5]  }
  0x9b   :  { %v215_v21 = vperm.slane %v166_v14, %v214_v27  ;;  %v153_v48 = vpop.xlane.xlu2 %152  ;;  %v1282_v42 = vadd.s32 16, %v1278_v24  ;;  %v1285_v14 = vadd.s32 8, %v1278_v24  ;;  %s859_s30 = sshll.u32 %s1044_s4, 4  ;;  %s860_s30 = int_to_ptr.vmem [resolvable:$true] %s859_s30 }
  0x9c   :  { %v225_v61 = vperm.slane %v171_v57, %v210_v49  ;;  %v172_v10 = vmul.f32 %v160_v8, %v153_v48  ;;  %v90_v49 = vld [vmem:[%s1716_s5 + $0x10] sm:$0xff]  ;;  %v92_v8 = vld [vmem:[%s1716_s5 + $0x20] sm:$0xff] }
  0x9d   :  { %v217_v63 = vsel %vm216_vm5, %v215_v21, %v213_v43  ;;  %319 = vperm.xlu2 %894, %v90_v49   ;;  %v1302_v49 = vadd.s32 32, %v1278_v24 }
  0x9e   :  { %v227_v60 = vperm.slane %v172_v10, %v214_v27  ;;  %v226_v15 = vsel %vm212_vm4, %v225_v61, %v224_v37 }
  0x9f   :  { %329 = vperm.xlu1 %893, %v92_v8   ;;  %v1305_v8 = vadd.s32 24, %v1278_v24 }
  0xa0   :  { %v228_v25 = vsel %vm216_vm5, %v227_v60, %v226_v15 }
  0xa1   :  { %v230_v29 = vsel %vm229_vm6, %v228_v25, %v217_v63  ;;  %896 = vset.pattern.permute.xlu0 %v1285_v14 }
  0xa2   :  { %874 = vmatmul.msk.f32.vlgmr.msra.gmra.mxu0 %vm231_vm7, %v230_v29 }
  0xa5   :  { %324 = vperm.xlu2 %894, %v91_v62  }
  0xa7   :  { %895 = vset.pattern.permute.xlu1 %v1278_v24 }
  0xad   :  { %334 = vperm.xlu2 %894, %v93_v52  }
  0xb5   :  { %897 = vset.pattern.permute.xlu2 %v1282_v42 }
  0xf7   :  { %v1294_v31 = vpop.permute.xlu2 %319 }
  0xff   :  { %v1324_v32 = vpop.permute.xlu2 %324 }
 0x109   :  { %v1299_v33 = vpop.permute.xlu1 %314 }
 0x10a   :  { %v341_v62 = vmul.f32 %v1299_v33, %v1127_v22  ;;  %v342_v52 = vmul.f32 %v1299_v33, %v1129_v23  ;;  %v346_v22 = vmul.f32 %v1294_v31, %v1109_v12 }
 0x10b   :  { %v310_v23 = vpop.permute.xlu0 %309 }
 0x11f   :  { %v251_v35 = vpop.f32.mrf.mxu0 }
 0x120   :  { %v252_v51 = vadd.f32 %v907_v54, %v251_v35  ;;  %v343_v54 = vmul.f32 %v1299_v33, %v1133_v26  ;;  %v344_v35 = vmul.f32 %v1299_v33, %v1154_v38  ;;  %v338_v26 = vmul.f32 %v310_v23, %v1096_v5  ;;  %v1338_v5 = vpop.permute.xlu1 %329 }
 0x121   :  { %v339_v38 = vmul.f32 %v310_v23, %v1100_v7  ;;  %v351_v7 = vmul.f32 %v1324_v32, %v1175_v50  ;;  %v354_v50 = vmul.f32 %v1338_v5, %v1168_v46 }
 0x122   :  { %v254_v27 = vmax.f32 %v252_v51, 0.0  ;;  %v345_v51 = vmul.f32 %v1294_v31, %v1104_v9 }
 0x124   :  { %876 = vmatmul.msk.f32.vlgmr.msra.gmra.mxu1 %vm260_vm9, %v254_v27  ;;  %v347_v27 = vmul.f32 %v1294_v31, %v1111_v13 }
 0x1a1   :  { %v285_v47 = vpop.f32.mrf.mxu1 }
 0x1a2   :  { %v286_v57 = vadd.f32 %v908_v41, %v285_v47  ;;  %v337_v41 = vmul.f32 %v310_v23, %v1094_v4  ;;  %v340_v47 = vmul.f32 %v310_v23, %v1107_v11  ;;  %v350_v4 = vmul.f32 %v1324_v32, %v1158_v40 }
 0x1a3   :  { %v353_v40 = vmul.f32 %v1338_v5, %v1166_v45 }
 0x1a4   :  { %v877_v21 = vmul.f32 -1.442695, %v286_v57  ;;  %v348_v57 = vmul.f32 %v1294_v31, %v1123_v20 }
 0x1a6   :  { %911 = vpow2.f32 %v877_v21  ;;  %v385_v21 = vadd.f32 %v341_v62, %v337_v41  ;;  %v369_v62 = vmul.f32 %v1294_v31, %v1137_v28  ;;  %v363_v28 = vmul.f32 %v310_v23, %v1090_v2  ;;  %v1750_v2 = vld [vmem:[#allocation9_spill] sm:$0xff] }
 0x1a8   :  { %v386_v11 = vadd.f32 %v385_v21, %v345_v51  ;;  %v658_v51 = vadd.s32 40, %v1278_v24 }
 0x1ac   :  { %v912_v48 = vpop.eup %911 }
 0x1ad   :  { %v291_v53 = vadd.f32 1.0, %v912_v48  ;;  %v396_v48 = vadd.f32 %v342_v52, %v338_v26  ;;  %v367_v26 = vmul.f32 %v1299_v33, %v1120_v18  ;;  %v373_v18 = vmul.f32 %v1324_v32, %v1150_v36 }
 0x1af   :  { %913 = vrcp.f32 %v291_v53  ;;  %v303_v43 = vand.u32 2147483648, %v291_v53  ;;  %v301_v63 = vand.u32 2147483647, %v291_v53  ;;  %vm297_vm11 = vweird.f32 %v291_v53 }
 0x1b1   :  { %v304_v25 = vor.u32 1.1754944e-38, %v303_v43  ;;  %vm302_vm13 = vcmp.eq.f32.partialorder %v301_v63, 8.507059e+37  ;;  %v397_v43 = vadd.f32 %v396_v48, %v346_v22  ;;  %v365_v63 = vmul.f32 %v1299_v33, %v1116_v16 }
 0x1b2   :  { %v355_v16 = vmul.f32 %v1338_v5, %v1183_v55  ;;  %v366_v22 = vmul.f32 %v1299_v33, %v1118_v17  ;;  %v370_v48 = vmul.f32 %v1294_v31, %v1140_v30  ;;  %v1752_v30 = vld [vmem:[#allocation8_spill] sm:$0xff] }
 0x1b5   :  { %v914_v61 = vpop.eup %913 }
 0x1b6   :  { %v293_v10 = vmul.f32 %v914_v61, %v291_v53  ;;  %vm298_vm10 = vweird.f32 %v914_v61  ;;  %v407_v53 = vadd.f32 %v343_v54, %v339_v38  ;;  %v362_v38 = vmul.f32 %v310_v23, %v1088_v1 }
 0x1b7   :  { %vm299_vm12 = vmor %vm297_vm11, %vm298_vm10 }
 0x1b8   :  { %v294_v37 = vsub.f32 1.0, %v293_v10 }
 0x1ba   :  { %v295_v60 = vmul.f32 %v914_v61, %v294_v37  ;;  %v349_v37 = vmul.f32 %v1324_v32, %v1156_v39 }
 0x1bc   :  { %v296_v15 = vadd.f32 %v914_v61, %v295_v60  ;;  %v408_v60 = vadd.f32 %v407_v53, %v347_v27 }
 0x1be   :  { %v300_v29 = vsel %vm299_vm12, %v914_v61, %v296_v15  ;;  %v418_v61 = vadd.f32 %v344_v35, %v340_v47  ;;  %v352_v15 = vmul.f32 %v1324_v32, %v1190_v59  ;;  %v356_v59 = vmul.f32 %v1338_v5, %v1198_v3  ;;  %v1360_v35 = vpop.permute.xlu2 %334 }
 0x1bf   :  { %v305_v44 = vsel %vm302_vm13, %v304_v25, %v300_v29  ;;  %v361_v25 = vmul.f32 %v310_v23, %v1086_v0  ;;  %v387_v0 = vadd.f32 %v386_v11, %v349_v37  ;;  %v398_v29 = vadd.f32 %v397_v43, %v350_v4 }
 0x1c0   :  { %v1292_v6 = vperm.slane %v305_v44, 0  ;;  %v1332_v10 = vperm.slane %v305_v44, 1  ;;  %v419_v39 = vadd.f32 %v418_v61, %v348_v57  ;;  %v409_v44 = vadd.f32 %v408_v60, %v351_v7 }
 0x1c1   :  { %v429_v52 = vadd.f32 %v365_v63, %v361_v25  ;;  %v388_v27 = vadd.f32 %v387_v0, %v353_v40  ;;  %v399_v41 = vadd.f32 %v398_v29, %v354_v50  ;;  %v357_v21 = vmul.f32 %v1360_v35, %v1185_v56  ;;  %v1753_v63 = vld [vmem:[#allocation15_spill] sm:$0xff]  ;;  %v1754_v40 = vld [vmem:[#allocation12_spill] sm:$0xff] }
 0x1c2   :  { %642 = vperm.xlu2 %897, %v1292_v6   ;;  %636 = vperm.xlu0 %896, %v1292_v6   ;;  %v420_v54 = vadd.f32 %v419_v39, %v352_v15  ;;  %v410_v47 = vadd.f32 %v409_v44, %v355_v16  ;;  %v359_v17 = vmul.f32 %v1360_v35, %v1207_v19  ;;  %v1751_v19 = vld [vmem:[#allocation10_spill] sm:$0xff] }
 0x1c3   :  { %630 = vperm.xlu1 %895, %v1292_v6   ;;  %v430_v1 = vadd.f32 %v429_v52, %v369_v62  ;;  %v360_v53 = vmul.f32 %v1360_v35, %v1219_v34  ;;  %v371_v56 = vmul.f32 %v1294_v31, %v1750_v2  ;;  %v368_v37 = vmul.f32 %v1299_v33, %v1751_v19  ;;  %v1755_v33 = vld [vmem:[#allocation11_spill] sm:$0xff]  ;;  %v1756_v62 = vld [vmem:[#allocation13_spill] sm:$0xff] }
 0x1c4   :  { %v421_v57 = vadd.f32 %v420_v54, %v356_v59  ;;  %v364_v4 = vmul.f32 %v310_v23, %v1752_v30  ;;  %v411_v7 = vadd.f32 %v410_v47, %v359_v17  ;;  %v440_v11 = vadd.f32 %v366_v22, %v362_v38 }
 0x1c5   :  { %v451_v43 = vadd.f32 %v367_v26, %v363_v28  ;;  %v431_v15 = vadd.f32 %v430_v1, %v373_v18  ;;  %v372_v50 = vmul.f32 %v1294_v31, %v1754_v40  ;;  %v374_v23 = vmul.f32 %v1324_v32, %v1755_v33  ;;  %v1757_v31 = vld [vmem:[#allocation17_spill] sm:$0xff]  ;;  %v1759_v1 = vld [vmem:[#allocation16_spill] sm:$0xff] }
 0x1c6   :  { %v422_v36 = vadd.f32 %v421_v57, %v360_v53  ;;  %v412_v25 = vrot.slane %v411_v7, 4  ;;  %v462_v0 = vadd.f32 %v368_v37, %v364_v4  ;;  %v375_v52 = vmul.f32 %v1324_v32, %v1756_v62 }
 0x1c7   :  { %v441_v54 = vadd.f32 %v440_v11, %v370_v48  ;;  %v381_v47 = vmul.f32 %v1360_v35, %v1757_v31  ;;  %v378_v53 = vmul.f32 %v1338_v5, %v1759_v1 }
 0x1c8   :  { %v423_v39 = vrot.slane %v422_v36, 4  ;;  %v413_v29 = vadd.f32 %v412_v25, %v411_v7  ;;  %v463_v17 = vadd.f32 %v462_v0, %v372_v50  ;;  %v1761_v7 = vld [vmem:[#allocation21_spill] sm:$0xff] }
 0x1c9   :  { %v442_v2 = vadd.f32 %v441_v54, %v374_v23 }
 0x1ca   :  { %899 = vset.pattern.permute.xlu2 %v1302_v49  ;;  %901 = vset.pattern.permute.xlu0 %v1278_v24  ;;  %v358_v24 = vmul.f32 %v1360_v35, %v1188_v58  ;;  %v389_v58 = vadd.f32 %v388_v27, %v357_v21  ;;  %v424_v44 = vadd.f32 %v423_v39, %v422_v36  ;;  %v414_v26 = vrot.slane %v413_v29, 2  ;;  %v1758_v21 = vld [vmem:[#allocation14_spill] sm:$0xff] }
 0x1cb   :  { %898 = vset.pattern.permute.xlu1 %v1305_v8  ;;  %v452_v27 = vadd.f32 %v451_v43, %v371_v56  ;;  %v443_v11 = vadd.f32 %v442_v2, %v378_v53  ;;  %v1762_v43 = vld [vmem:[#allocation18_spill] sm:$0xff] }
 0x1cc   :  { %v400_v61 = vadd.f32 %v399_v41, %v358_v24  ;;  %v390_v60 = vrot.slane %v389_v58, 4  ;;  %v425_v38 = vrot.slane %v424_v44, 2  ;;  %v376_v24 = vmul.f32 %v1324_v32, %v1758_v21 }
 0x1cd   :  { %v415_v48 = vadd.f32 %v414_v26, %v413_v29  ;;  %v453_v19 = vadd.f32 %v452_v27, %v375_v52 }
 0x1ce   :  { %v401_v34 = vrot.slane %v400_v61, 4  ;;  %v391_v16 = vadd.f32 %v390_v60, %v389_v58  ;;  %v426_v18 = vadd.f32 %v425_v38, %v424_v44  ;;  %v1760_v58 = vld [vmem:[#allocation19_spill] sm:$0xff]  ;;  %v464_v36 = vadd.f32 %v463_v17, %v376_v24 }
 0x1cf   :  { %v416_v30 = vrot.slane %v415_v48, 1  ;;  %v382_v60 = vmul.f32 %v1360_v35, %v1762_v43 }
 0x1d0   :  { %v402_v59 = vadd.f32 %v401_v34, %v400_v61  ;;  %v379_v61 = vmul.f32 %v1338_v5, %v1760_v58  ;;  %v427_v32 = vrot.slane %v426_v18, 1 }
 0x1d1   :  { %v417_v39 = vadd.f32 %v416_v30, %v415_v48  ;;  %v444_v33 = vadd.f32 %v443_v11, %v382_v60 }
 0x1d2   :  { %654 = vperm.xlu2 %899, %v1292_v6   ;;  %667 = vperm.xlu0 %901, %v1332_v10   ;;  %v403_v22 = vrot.slane %v402_v59, 2 }
 0x1d3   :  { %648 = vperm.xlu1 %898, %v1292_v6   ;;  %v880_v62 = vmul.f32 -1.442695, %v417_v39 }
 0x1d4   :  { %v404_v28 = vadd.f32 %v403_v22, %v402_v59  ;;  %v428_v59 = vadd.f32 %v427_v32, %v426_v18 }
 0x1d6   :  { %v405_v37 = vrot.slane %v404_v28, 1  ;;  %v881_v54 = vmul.f32 -1.442695, %v428_v59 }
 0x1d8   :  { %v406_v25 = vadd.f32 %v405_v37, %v404_v28 }
 0x1da   :  { %902 = vset.pattern.permute.xlu2 %v1285_v14  ;;  %906 = vset.pattern.permute.xlu0 %v658_v51  ;;  %v377_v14 = vmul.f32 %v1338_v5, %v1753_v63  ;;  %v454_v63 = vadd.f32 %v453_v19, %v379_v61  ;;  %v879_v29 = vmul.f32 -1.442695, %v406_v25 }
 0x1db   :  { %900 = vset.pattern.permute.xlu1 %v658_v51  ;;  %v392_v51 = vrot.slane %v391_v16, 2 }
 0x1dc   :  { %v432_v41 = vadd.f32 %v431_v15, %v377_v14  ;;  %v1763_v14 = vld [vmem:[#allocation20_spill] sm:$0xff] }
 0x1dd   :  { %v393_v57 = vadd.f32 %v392_v51, %v391_v16  ;;  %v383_v15 = vmul.f32 %v1360_v35, %v1763_v14  ;;  %v445_v51 = vrot.slane %v444_v33, 4 }
 0x1de   :  { %v433_v4 = vadd.f32 %v432_v41, %v381_v47 }
 0x1df   :  { %v394_v56 = vrot.slane %v393_v57, 1  ;;  %v455_v0 = vadd.f32 %v454_v63, %v383_v15 }
 0x1e0   :  { %v434_v40 = vrot.slane %v433_v4, 4 }
 0x1e1   :  { %v395_v34 = vadd.f32 %v394_v56, %v393_v57 }
 0x1e2   :  { %673 = vperm.xlu2 %902, %v1332_v10   ;;  %697 = vperm.xlu0 %906, %v1332_v10   ;;  %v435_v44 = vadd.f32 %v434_v40, %v433_v4 }
 0x1e3   :  { %660 = vperm.xlu1 %900, %v1292_v6   ;;  %v380_v6 = vmul.f32 %v1338_v5, %v1761_v7  ;;  %v1764_v5 = vld [vmem:[#allocation22_spill] sm:$0xff]  ;;  %v878_v23 = vmul.f32 -1.442695, %v395_v34 }
 0x1e4   :  { %v384_v16 = vmul.f32 %v1360_v35, %v1764_v5  ;;  %v436_v22 = vrot.slane %v435_v44, 2  ;;  %v446_v35 = vadd.f32 %v445_v51, %v444_v33 }
 0x1e5   :  { %v465_v50 = vadd.f32 %v464_v36, %v380_v6  ;;  %915 = vpow2.f32 %v878_v23 }
 0x1e6   :  { %917 = vpow2.f32 %v879_v29  ;;  %v437_v26 = vadd.f32 %v436_v22, %v435_v44  ;;  %v447_v57 = vrot.slane %v446_v35, 2 }
 0x1e7   :  { %v466_v52 = vadd.f32 %v465_v50, %v384_v16  ;;  %919 = vpow2.f32 %v880_v62 }
 0x1e8   :  { %921 = vpow2.f32 %v881_v54  ;;  %v438_v17 = vrot.slane %v437_v26, 1  ;;  %v448_v53 = vadd.f32 %v447_v57, %v446_v35 }
 0x1ea   :  { %904 = vset.pattern.permute.xlu2 %v1305_v8  ;;  %v456_v8 = vrot.slane %v455_v0, 4  ;;  %v439_v58 = vadd.f32 %v438_v17, %v437_v26  ;;  %v449_v19 = vrot.slane %v448_v53, 1 }
 0x1eb   :  { %903 = vset.pattern.permute.xlu1 %v1282_v42  ;;  %v467_v42 = vrot.slane %v466_v52, 4  ;;  %v916_v41 = vpop.eup %915 }
 0x1ec   :  { %v457_v27 = vadd.f32 %v456_v8, %v455_v0  ;;  %v918_v38 = vpop.eup %917  ;;  %v1418_v24 = vadd.f32 1.0, %v916_v41  ;;  %v882_v30 = vmul.f32 -1.442695, %v439_v58  ;;  %v450_v6 = vadd.f32 %v449_v19, %v448_v53 }
 0x1ed   :  { %v468_v31 = vadd.f32 %v467_v42, %v466_v52  ;;  %v920_v47 = vpop.eup %919  ;;  %v1420_v48 = vadd.f32 1.0, %v918_v38 }
 0x1ee   :  { %v922_v28 = vpop.eup %921  ;;  %v458_v21 = vrot.slane %v457_v27, 2  ;;  %v1422_v1 = vadd.f32 1.0, %v920_v47  ;;  %923 = vrcp.f32 %v1418_v24  ;;  %v883_v60 = vmul.f32 -1.442695, %v450_v6 }
 0x1ef   :  { %v469_v18 = vrot.slane %v468_v31, 2  ;;  %v1425_v2 = vadd.f32 1.0, %v922_v28  ;;  %925 = vrcp.f32 %v1420_v48  ;;  %vm510_vm14 = vweird.f32 %v1418_v24 }
 0x1f0   :  { %v459_v56 = vadd.f32 %v458_v21, %v457_v27  ;;  %927 = vrcp.f32 %v1422_v1  ;;  %vm525_vm0 = vweird.f32 %v1420_v48  ;;  %v516_v62 = vand.u32 2147483648, %v1418_v24 }
 0x1f1   :  { %v470_v61 = vadd.f32 %v469_v18, %v468_v31  ;;  %929 = vrcp.f32 %v1425_v2  ;;  %v531_v52 = vand.u32 2147483648, %v1420_v48  ;;  %vm540_vm2 = vweird.f32 %v1422_v1 }
 0x1f2   :  { %685 = vperm.xlu2 %904, %v1332_v10   ;;  %v460_v37 = vrot.slane %v459_v56, 1  ;;  %931 = vpow2.f32 %v882_v30  ;;  %v514_v8 = vand.u32 2147483647, %v1418_v24  ;;  %v529_v22 = vand.u32 2147483647, %v1420_v48 }
 0x1f3   :  { %679 = vperm.xlu1 %903, %v1332_v10   ;;  %933 = vpow2.f32 %v883_v60  ;;  %vm555_vm5 = vweird.f32 %v1425_v2  ;;  %v544_v27 = vand.u32 2147483647, %v1422_v1  ;;  %v546_v41 = vand.u32 2147483648, %v1422_v1 }
 0x1f4   :  { %v1431_v4 = vpop.eup %923  ;;  %v461_v32 = vadd.f32 %v460_v37, %v459_v56  ;;  %v561_v26 = vand.u32 2147483648, %v1425_v2  ;;  %v559_v21 = vand.u32 2147483647, %v1425_v2  ;;  %vm1507_vm10 = vcmp.eq.f32.partialorder %v514_v8, 8.507059e+37 }
 0x1f5   :  { %v1434_v7 = vpop.eup %925  ;;  %v506_v34 = vmul.f32 %v1431_v4, %v1418_v24  ;;  %vm511_vm15 = vweird.f32 %v1431_v4  ;;  %vm1511_vm11 = vcmp.eq.f32.partialorder %v529_v22, 8.507059e+37  ;;  %v532_v56 = vor.u32 1.1754944e-38, %v531_v52 }
 0x1f6   :  { %v1436_v36 = vpop.eup %927  ;;  %v884_v63 = vmul.f32 -1.442695, %v461_v32  ;;  %v521_v14 = vmul.f32 %v1434_v7, %v1420_v48  ;;  %vm526_vm1 = vweird.f32 %v1434_v7  ;;  %vm1462_vm4 = vmor %vm510_vm14, %vm511_vm15  ;;  %vm545_vm12 = vcmp.eq.f32.partialorder %v544_v27, 8.507059e+37 }
 0x1f7   :  { %v1438_v11 = vpop.eup %929  ;;  %v507_v40 = vsub.f32 1.0, %v506_v34  ;;  %vm541_vm3 = vweird.f32 %v1436_v36  ;;  %vm1475_vm7 = vmor %vm525_vm0, %vm526_vm1  ;;  %vm560_vm13 = vcmp.eq.f32.partialorder %v559_v21, 8.507059e+37 }
 0x1f8   :  { %v551_v15 = vmul.f32 %v1438_v11, %v1425_v2  ;;  %v932_v39 = vpop.eup %931  ;;  %935 = vpow2.f32 %v884_v63  ;;  %v522_v50 = vsub.f32 1.0, %v521_v14  ;;  %vm556_vm6 = vweird.f32 %v1438_v11  ;;  %vm1488_vm8 = vmor %vm540_vm2, %vm541_vm3 }
 0x1f9   :  { %v1448_v59 = vadd.f32 1.0, %v932_v39  ;;  %v508_v33 = vmul.f32 %v1431_v4, %v507_v40  ;;  %v934_v44 = vpop.eup %933  ;;  %vm1503_vm9 = vmor %vm555_vm5, %vm556_vm6  ;;  %v547_v2 = vor.u32 1.1754944e-38, %v546_v41  ;;  %v954_v41 = vld [vmem:[#allocation2 + $0x38] sm:$0xff] }
 0x1fa   :  { %v552_v16 = vsub.f32 1.0, %v551_v15  ;;  %v523_v23 = vmul.f32 %v1434_v7, %v522_v50  ;;  %v1494_v24 = vadd.f32 1.0, %v934_v44 }
 0x1fb   :  { %905 = vset.pattern.permute.xlu1 %v1302_v49  ;;  %v471_v49 = vrot.slane %v470_v61, 1  ;;  %v509_v42 = vadd.f32 %v1431_v4, %v508_v33  ;;  %vm570_vm14 = vweird.f32 %v1448_v59  ;;  %v576_v8 = vand.u32 2147483648, %v1448_v59 }
 0x1fc   :  { %v553_v29 = vmul.f32 %v1438_v11, %v552_v16  ;;  %v524_v31 = vadd.f32 %v1434_v7, %v523_v23  ;;  %vm585_vm0 = vweird.f32 %v1494_v24  ;;  %v591_v21 = vand.u32 2147483648, %v1494_v24 }
 0x1fd   :  { %v472_v43 = vadd.f32 %v471_v49, %v470_v61  ;;  %v513_v58 = vsel %vm1462_vm4, %v1431_v4, %v509_v42  ;;  %v562_v61 = vor.u32 1.1754944e-38, %v561_v26  ;;  %v574_v26 = vand.u32 2147483647, %v1448_v59 }
 0x1fe   :  { %v936_v54 = vpop.eup %935  ;;  %v554_v28 = vadd.f32 %v1438_v11, %v553_v29  ;;  %v528_v19 = vsel %vm1475_vm7, %v1434_v7, %v524_v31  ;;  %v589_v48 = vand.u32 2147483647, %v1494_v24 }
 0x1ff   :  { %v885_v25 = vmul.f32 -1.442695, %v472_v43  ;;  %v1496_v17 = vadd.f32 1.0, %v936_v54  ;;  %vm1617_vm7 = vcmp.eq.f32.partialorder %v574_v26, 8.507059e+37 }
 0x200   :  { %v558_v30 = vsel %vm1503_vm9, %v1438_v11, %v554_v28 }
 0x201   :  { %937 = vpow2.f32 %v885_v25  ;;  %v1543_v11 = vsel %vm560_vm13, %v562_v61, %v558_v30  ;;  %vm600_vm3 = vweird.f32 %v1496_v17 }
 0x202   :  { %939 = vrcp.f32 %v1448_v59 }
 0x203   :  { %691 = vperm.xlu1 %905, %v1332_v10   ;;  %v536_v10 = vmul.f32 %v1436_v36, %v1422_v1  ;;  %v517_v1 = vor.u32 1.1754944e-38, %v516_v62  ;;  %941 = vrcp.f32 %v1494_v24 }
 0x204   :  { %943 = vrcp.f32 %v1496_v17 }
 0x205   :  { %v537_v5 = vsub.f32 1.0, %v536_v10  ;;  %v1535_v7 = vsel %vm1507_vm10, %v517_v1, %v513_v58  ;;  %vm1627_vm10 = vcmp.eq.f32.partialorder %v589_v48, 8.507059e+37 }
 0x207   :  { %v538_v0 = vmul.f32 %v1436_v36, %v537_v5  ;;  %v938_v38 = vpop.eup %937 }
 0x208   :  { %v1527_v49 = vadd.f32 1.0, %v938_v38  ;;  %v1531_v4 = vpop.eup %939 }
 0x209   :  { %v539_v47 = vadd.f32 %v1436_v36, %v538_v0  ;;  %v1550_v10 = vpop.eup %941  ;;  %v566_v5 = vmul.f32 %v1531_v4, %v1448_v59  ;;  %vm571_vm15 = vweird.f32 %v1531_v4 }
 0x20a   :  { %945 = vrcp.f32 %v1527_v49  ;;  %v1552_v15 = vpop.eup %943  ;;  %v581_v33 = vmul.f32 %v1550_v10, %v1494_v24  ;;  %vm586_vm1 = vweird.f32 %v1550_v10  ;;  %vm1583_vm2 = vmor %vm570_vm14, %vm571_vm15  ;;  %v621_v1 = vand.u32 2147483648, %v1527_v49 }
 0x20b   :  { %v543_v37 = vsel %vm1488_vm8, %v1436_v36, %v539_v47  ;;  %v1539_v36 = vsel %vm1511_vm11, %v532_v56, %v528_v19  ;;  %vm601_vm4 = vweird.f32 %v1552_v15  ;;  %vm1596_vm5 = vmor %vm585_vm0, %vm586_vm1  ;;  %v577_v56 = vor.u32 1.1754944e-38, %v576_v8 }
 0x20c   :  { %v1541_v32 = vsel %vm545_vm12, %v547_v2, %v543_v37  ;;  %v582_v23 = vsub.f32 1.0, %v581_v33  ;;  %vm1606_vm6 = vmor %vm600_vm3, %vm601_vm4  ;;  %v592_v19 = vor.u32 1.1754944e-38, %v591_v21  ;;  %vm615_vm8 = vweird.f32 %v1527_v49 }
 0x20d   :  { %v622_v33 = vor.u32 1.1754944e-38, %v621_v1  ;;  %v958_v1 = vld [vmem:[#allocation2 + $0xf8] sm:$0xff] }
 0x20e   :  { %v583_v44 = vmul.f32 %v1550_v10, %v582_v23  ;;  %v949_v23 = vld [vmem:[#allocation2 + $0x8] sm:$0xff] }
 0x210   :  { %v1560_v16 = vpop.eup %945  ;;  %v1589_v38 = vadd.f32 %v1550_v10, %v583_v44  ;;  %v951_v44 = vld [vmem:[#allocation2 + $0x18] sm:$0xff] }
 0x211   :  { %vm616_vm9 = vweird.f32 %v1560_v16 }
 0x212   :  { %v588_v58 = vsel %vm1596_vm5, %v1550_v10, %v1589_v38  ;;  %vm1646_vm11 = vmor %vm615_vm8, %vm616_vm9 }
 0x213   :  { %v1665_v38 = vsel %vm1627_vm10, %v592_v19, %v588_v58 }
 0x21c   :  { %v643_v6 = vpop.permute.xlu2 %642 }
 0x21d   :  { %v701_v43 = vadd.f32 1.0, %v643_v6  ;;  %v604_v6 = vand.u32 2147483647, %v1496_v17 }
 0x21f   :  { %v719_v60 = vadd.f32 %v701_v43, %v1535_v7  ;;  %v720_v34 = vadd.f32 %v701_v43, %v1539_v36  ;;  %v721_v63 = vadd.f32 %v701_v43, %v1541_v32  ;;  %v722_v14 = vadd.f32 %v701_v43, %v1543_v11 }
 0x220   :  { %vm1652_vm12 = vcmp.eq.f32.partialorder %v604_v6, 8.507059e+37 }
 0x221   :  { %v767_v25 = vmul.f32 %v719_v60, %v1104_v9  ;;  %v768_v39 = vmul.f32 %v720_v34, %v1109_v12  ;;  %v769_v40 = vmul.f32 %v721_v63, %v1111_v13  ;;  %v770_v50 = vmul.f32 %v722_v14, %v1123_v20 }
 0x222   :  { %v596_v9 = vmul.f32 %v1552_v15, %v1496_v17  ;;  %v567_v12 = vsub.f32 1.0, %v566_v5  ;;  %v611_v13 = vmul.f32 %v1560_v16, %v1527_v49  ;;  %v619_v63 = vand.u32 2147483647, %v1527_v49 }
 0x223   :  { %815 = vst [vmem:[#allocation5 + $0x40] sm:$0xff] %v767_v25 }
 0x224   :  { %816 = vst [vmem:[#allocation5 + $0x48] sm:$0xff] %v768_v39  ;;  %v597_v20 = vsub.f32 1.0, %v596_v9  ;;  %v568_v0 = vmul.f32 %v1531_v4, %v567_v12  ;;  %v612_v62 = vsub.f32 1.0, %v611_v13  ;;  %v948_v9 = vld [vmem:[#allocation2] sm:$0xff]  ;;  %vm620_vm13 = vcmp.eq.f32.partialorder %v619_v63, 8.507059e+37 }
 0x225   :  { %817 = vst [vmem:[#allocation5 + $0x50] sm:$0xff] %v769_v40  ;;  %v947_v40 = vld [vmem:[#allocation2 + $0x20] sm:$0xff] }
 0x226   :  { %818 = vst [vmem:[#allocation5 + $0x58] sm:$0xff] %v770_v50  ;;  %v598_v54 = vmul.f32 %v1552_v15, %v597_v20  ;;  %v1574_v51 = vadd.f32 %v1531_v4, %v568_v0  ;;  %v950_v20 = vld [vmem:[#allocation2 + $0x10] sm:$0xff] }
 0x228   :  { %v1604_v18 = vadd.f32 %v1552_v15, %v598_v54  ;;  %v952_v54 = vld [vmem:[#allocation2 + $0x28] sm:$0xff] }
 0x22c   :  { %v655_v29 = vpop.permute.xlu2 %654 }
 0x22d   :  { %v703_v52 = vadd.f32 1.0, %v655_v29 }
 0x22f   :  { %v727_v22 = vadd.f32 %v703_v52, %v1535_v7  ;;  %v728_v42 = vadd.f32 %v703_v52, %v1539_v36  ;;  %v729_v35 = vadd.f32 %v703_v52, %v1541_v32  ;;  %v730_v27 = vadd.f32 %v703_v52, %v1543_v11 }
 0x231   :  { %v775_v31 = vmul.f32 %v727_v22, %v1166_v45  ;;  %v776_v47 = vmul.f32 %v728_v42, %v1168_v46  ;;  %v777_v57 = vmul.f32 %v729_v35, %v1183_v55  ;;  %v778_v59 = vmul.f32 %v730_v27, %v1198_v3  ;;  %v953_v22 = vld [vmem:[#allocation2 + $0x30] sm:$0xff] }
 0x232   :  { %v606_v46 = vand.u32 2147483648, %v1496_v17  ;;  %v613_v55 = vmul.f32 %v1560_v16, %v612_v62  ;;  %v573_v3 = vsel %vm1583_vm2, %v1531_v4, %v1574_v51  ;;  %v603_v4 = vsel %vm1606_vm6, %v1552_v15, %v1604_v18  ;;  %v956_v18 = vld [vmem:[#allocation2 + $0xe8] sm:$0xff]  ;;  %v967_v62 = vld [vmem:[#allocation2 + $0x120] sm:$0xff] }
 0x233   :  { %823 = vst [vmem:[#allocation5 + $0x80] sm:$0xff] %v775_v31  ;;  %v1661_v35 = vsel %vm1617_vm7, %v577_v56, %v573_v3 }
 0x234   :  { %824 = vst [vmem:[#allocation5 + $0x88] sm:$0xff] %v776_v47  ;;  %v637_v53 = vpop.permute.xlu0 %636  ;;  %v614_v34 = vadd.f32 %v1560_v16, %v613_v55  ;;  %v607_v5 = vor.u32 1.1754944e-38, %v606_v46  ;;  %v957_v46 = vld [vmem:[#allocation2 + $0xf0] sm:$0xff] }
 0x235   :  { %825 = vst [vmem:[#allocation5 + $0x90] sm:$0xff] %v777_v57  ;;  %v631_v2 = vpop.permute.xlu1 %630  ;;  %v700_v61 = vadd.f32 1.0, %v637_v53 }
 0x236   :  { %826 = vst [vmem:[#allocation5 + $0x98] sm:$0xff] %v778_v59  ;;  %v699_v37 = vadd.f32 1.0, %v631_v2  ;;  %v618_v52 = vsel %vm1646_vm11, %v1560_v16, %v614_v34  ;;  %v1669_v16 = vsel %vm1652_vm12, %v607_v5, %v603_v4  ;;  %v955_v59 = vld [vmem:[#allocation2 + $0xe0] sm:$0xff] }
 0x237   :  { %v715_v43 = vadd.f32 %v700_v61, %v1535_v7  ;;  %v716_v60 = vadd.f32 %v700_v61, %v1539_v36  ;;  %v717_v15 = vadd.f32 %v700_v61, %v1541_v32  ;;  %v718_v29 = vadd.f32 %v700_v61, %v1543_v11  ;;  %v960_v34 = vld [vmem:[#allocation2 + $0x60] sm:$0xff] }
 0x238   :  { %v711_v14 = vadd.f32 %v699_v37, %v1535_v7  ;;  %v712_v10 = vadd.f32 %v699_v37, %v1539_v36  ;;  %v713_v25 = vadd.f32 %v699_v37, %v1541_v32  ;;  %v714_v39 = vadd.f32 %v699_v37, %v1543_v11 }
 0x239   :  { %v763_v50 = vmul.f32 %v947_v40, %v715_v43  ;;  %v764_v51 = vmul.f32 %v952_v54, %v716_v60  ;;  %v765_v42 = vmul.f32 %v953_v22, %v717_v15  ;;  %v766_v26 = vmul.f32 %v954_v41, %v718_v29  ;;  %v959_v43 = vld [vmem:[#allocation2 + $0xc0] sm:$0xff]  ;;  %v963_v15 = vld [vmem:[#allocation2 + $0x78] sm:$0xff]  ;;  %v968_v54 = vld [vmem:[#allocation2 + $0x128] sm:$0xff] }
 0x23a   :  { %v759_v12 = vmul.f32 %v948_v9, %v711_v14  ;;  %v760_v13 = vmul.f32 %v949_v23, %v712_v10  ;;  %v761_v0 = vmul.f32 %v950_v20, %v713_v25  ;;  %v762_v49 = vmul.f32 %v951_v44, %v714_v39  ;;  %v961_v14 = vld [vmem:[#allocation2 + $0x68] sm:$0xff]  ;;  %v962_v25 = vld [vmem:[#allocation2 + $0x70] sm:$0xff] }
 0x23b   :  { %811 = vst [vmem:[#allocation5 + $0x20] sm:$0xff] %v763_v50  ;;  %v1671_v31 = vsel %vm620_vm13, %v622_v33, %v618_v52  ;;  %v964_v50 = vld [vmem:[#allocation2 + $0xc8] sm:$0xff]  ;;  %v965_v9 = vld [vmem:[#allocation2 + $0xd0] sm:$0xff] }
 0x23c   :  { %807 = vst [vmem:[#allocation5] sm:$0xff] %v759_v12  ;;  %v674_v8 = vpop.permute.xlu2 %673 }
 0x23d   :  { %808 = vst [vmem:[#allocation5 + $0x8] sm:$0xff] %v760_v13  ;;  %v706_v27 = vadd.f32 1.0, %v674_v8  ;;  %v966_v13 = vld [vmem:[#allocation2 + $0xd8] sm:$0xff]  ;;  %v969_v8 = vld [vmem:[#allocation2 + $0x130] sm:$0xff] }
 0x23e   :  { %809 = vst [vmem:[#allocation5 + $0x10] sm:$0xff] %v761_v0 }
 0x23f   :  { %810 = vst [vmem:[#allocation5 + $0x18] sm:$0xff] %v762_v49  ;;  %v739_v47 = vadd.f32 %v706_v27, %v1661_v35  ;;  %v740_v57 = vadd.f32 %v706_v27, %v1665_v38  ;;  %v741_v28 = vadd.f32 %v706_v27, %v1669_v16  ;;  %v742_v21 = vadd.f32 %v706_v27, %v1671_v31 }
 0x240   :  { %812 = vst [vmem:[#allocation5 + $0x28] sm:$0xff] %v764_v51 }
 0x241   :  { %813 = vst [vmem:[#allocation5 + $0x30] sm:$0xff] %v765_v42  ;;  %v787_v48 = vmul.f32 %v955_v59, %v739_v47  ;;  %v788_v45 = vmul.f32 %v956_v18, %v740_v57  ;;  %v789_v55 = vmul.f32 %v957_v46, %v741_v28  ;;  %v790_v53 = vmul.f32 %v958_v1, %v742_v21  ;;  %v970_v42 = vld [vmem:[#allocation2 + $0x138] sm:$0xff] }
 0x242   :  { %814 = vst [vmem:[#allocation5 + $0x38] sm:$0xff] %v766_v26 }
 0x243   :  { %835 = vst [vmem:[#allocation5 + $0xe0] sm:$0xff] %v787_v48 }
 0x244   :  { %836 = vst [vmem:[#allocation5 + $0xe8] sm:$0xff] %v788_v45  ;;  %v668_v3 = vpop.permute.xlu0 %667 }
 0x245   :  { %837 = vst [vmem:[#allocation5 + $0xf0] sm:$0xff] %v789_v55  ;;  %v649_v24 = vpop.permute.xlu1 %648  ;;  %v705_v56 = vadd.f32 1.0, %v668_v3  ;;  %v971_v55 = vld [vmem:[#allocation2 + $0x160] sm:$0xff] }
 0x246   :  { %838 = vst [vmem:[#allocation5 + $0xf8] sm:$0xff] %v790_v53  ;;  %v702_v58 = vadd.f32 1.0, %v649_v24  ;;  %v972_v53 = vld [vmem:[#allocation2 + $0xa0] sm:$0xff]  ;;  %v973_v24 = vld [vmem:[#allocation2 + $0xa8] sm:$0xff] }
 0x247   :  { %v735_v2 = vadd.f32 %v705_v56, %v1661_v35  ;;  %v736_v61 = vadd.f32 %v705_v56, %v1665_v38  ;;  %v737_v6 = vadd.f32 %v705_v56, %v1669_v16  ;;  %v738_v17 = vadd.f32 %v705_v56, %v1671_v31 }
 0x248   :  { %v723_v19 = vadd.f32 %v702_v58, %v1535_v7  ;;  %v724_v37 = vadd.f32 %v702_v58, %v1539_v36  ;;  %v725_v30 = vadd.f32 %v702_v58, %v1541_v32  ;;  %v726_v4 = vadd.f32 %v702_v58, %v1543_v11  ;;  %v974_v58 = vld [vmem:[#allocation2 + $0xb0] sm:$0xff] }
 0x249   :  { %v783_v60 = vmul.f32 %v959_v43, %v735_v2  ;;  %v784_v5 = vmul.f32 %v964_v50, %v736_v61  ;;  %v785_v12 = vmul.f32 %v965_v9, %v737_v6  ;;  %v786_v20 = vmul.f32 %v966_v13, %v738_v17  ;;  %v982_v50 = vld [vmem:[#allocation2 + $0x118] sm:$0xff] }
 0x24a   :  { %v771_v63 = vmul.f32 %v960_v34, %v723_v19  ;;  %v772_v10 = vmul.f32 %v961_v14, %v724_v37  ;;  %v773_v39 = vmul.f32 %v962_v25, %v725_v30  ;;  %v774_v40 = vmul.f32 %v963_v15, %v726_v4  ;;  %v975_v19 = vld [vmem:[#allocation2 + $0xb8] sm:$0xff]  ;;  %v981_v15 = vld [vmem:[#allocation2 + $0x110] sm:$0xff] }
 0x24b   :  { %831 = vst [vmem:[#allocation5 + $0xc0] sm:$0xff] %v783_v60  ;;  %v978_v30 = vld [vmem:[#allocation2 + $0x178] sm:$0xff] }
 0x24c   :  { %819 = vst [vmem:[#allocation5 + $0x60] sm:$0xff] %v771_v63  ;;  %v686_v33 = vpop.permute.xlu2 %685 }
 0x24d   :  { %820 = vst [vmem:[#allocation5 + $0x68] sm:$0xff] %v772_v10  ;;  %v708_v23 = vadd.f32 1.0, %v686_v33  ;;  %v979_v10 = vld [vmem:[#allocation2 + $0x100] sm:$0xff] }
 0x24e   :  { %821 = vst [vmem:[#allocation5 + $0x70] sm:$0xff] %v773_v39  ;;  %v980_v39 = vld [vmem:[#allocation2 + $0x108] sm:$0xff] }
 0x24f   :  { %822 = vst [vmem:[#allocation5 + $0x78] sm:$0xff] %v774_v40  ;;  %v747_v0 = vadd.f32 %v708_v23, %v1661_v35  ;;  %v748_v29 = vadd.f32 %v708_v23, %v1665_v38  ;;  %v749_v44 = vadd.f32 %v708_v23, %v1669_v16  ;;  %v750_v49 = vadd.f32 %v708_v23, %v1671_v31 }
 0x250   :  { %832 = vst [vmem:[#allocation5 + $0xc8] sm:$0xff] %v784_v5 }
 0x251   :  { %833 = vst [vmem:[#allocation5 + $0xd0] sm:$0xff] %v785_v12  ;;  %v795_v52 = vmul.f32 %v967_v62, %v747_v0  ;;  %v796_v51 = vmul.f32 %v968_v54, %v748_v29  ;;  %v797_v22 = vmul.f32 %v969_v8, %v749_v44  ;;  %v798_v27 = vmul.f32 %v970_v42, %v750_v49  ;;  %v983_v0 = vld [vmem:[#allocation2 + $0x140] sm:$0xff]  ;;  %v984_v44 = vld [vmem:[#allocation2 + $0x148] sm:$0xff]  ;;  %v985_v62 = vld [vmem:[#allocation2 + $0x150] sm:$0xff] }
 0x252   :  { %834 = vst [vmem:[#allocation5 + $0xd8] sm:$0xff] %v786_v20  ;;  %v986_v54 = vld [vmem:[#allocation2 + $0x158] sm:$0xff] }
 0x253   :  { %843 = vst [vmem:[#allocation5 + $0x120] sm:$0xff] %v795_v52 }
 0x254   :  { %844 = vst [vmem:[#allocation5 + $0x128] sm:$0xff] %v796_v51  ;;  %v698_v41 = vpop.permute.xlu0 %697 }
 0x255   :  { %845 = vst [vmem:[#allocation5 + $0x130] sm:$0xff] %v797_v22  ;;  %v661_v26 = vpop.permute.xlu1 %660  ;;  %v710_v47 = vadd.f32 1.0, %v698_v41 }
 0x256   :  { %846 = vst [vmem:[#allocation5 + $0x138] sm:$0xff] %v798_v27  ;;  %v704_v57 = vadd.f32 1.0, %v661_v26 }
 0x257   :  { %v755_v28 = vadd.f32 %v710_v47, %v1661_v35  ;;  %v756_v21 = vadd.f32 %v710_v47, %v1665_v38  ;;  %v757_v46 = vadd.f32 %v710_v47, %v1669_v16  ;;  %v758_v61 = vadd.f32 %v710_v47, %v1671_v31 }
 0x258   :  { %v731_v59 = vadd.f32 %v704_v57, %v1535_v7  ;;  %v732_v48 = vadd.f32 %v704_v57, %v1539_v36  ;;  %v733_v18 = vadd.f32 %v704_v57, %v1541_v32  ;;  %v734_v45 = vadd.f32 %v704_v57, %v1543_v11  ;;  %v976_v36 = vld [vmem:[#allocation2 + $0x168] sm:$0xff]  ;;  %v977_v11 = vld [vmem:[#allocation2 + $0x170] sm:$0xff] }
 0x259   :  { %v803_v1 = vmul.f32 %v971_v55, %v755_v28  ;;  %v804_v32 = vmul.f32 %v976_v36, %v756_v21  ;;  %v805_v37 = vmul.f32 %v977_v11, %v757_v46  ;;  %v806_v4 = vmul.f32 %v978_v30, %v758_v61 }
 0x25a   :  { %v779_v3 = vmul.f32 %v972_v53, %v731_v59  ;;  %v780_v56 = vmul.f32 %v973_v24, %v732_v48  ;;  %v781_v2 = vmul.f32 %v974_v58, %v733_v18  ;;  %v782_v7 = vmul.f32 %v975_v19, %v734_v45 }
 0x25b   :  { %851 = vst [vmem:[#allocation5 + $0x160] sm:$0xff] %v803_v1 }
 0x25c   :  { %827 = vst [vmem:[#allocation5 + $0xa0] sm:$0xff] %v779_v3 }
 0x25d   :  { %828 = vst [vmem:[#allocation5 + $0xa8] sm:$0xff] %v780_v56 }
 0x25e   :  { %829 = vst [vmem:[#allocation5 + $0xb0] sm:$0xff] %v781_v2 }
 0x25f   :  { %830 = vst [vmem:[#allocation5 + $0xb8] sm:$0xff] %v782_v7 }
 0x260   :  { %852 = vst [vmem:[#allocation5 + $0x168] sm:$0xff] %v804_v32 }
 0x261   :  { %853 = vst [vmem:[#allocation5 + $0x170] sm:$0xff] %v805_v37 }
 0x262   :  { %854 = vst [vmem:[#allocation5 + $0x178] sm:$0xff] %v806_v4 }
 0x265   :  { %v680_v6 = vpop.permute.xlu1 %679 }
 0x266   :  { %v707_v43 = vadd.f32 1.0, %v680_v6 }
 0x268   :  { %v743_v60 = vadd.f32 %v707_v43, %v1661_v35  ;;  %v744_v34 = vadd.f32 %v707_v43, %v1665_v38  ;;  %v745_v63 = vadd.f32 %v707_v43, %v1669_v16  ;;  %v746_v14 = vadd.f32 %v707_v43, %v1671_v31 }
 0x26a   :  { %v791_v25 = vmul.f32 %v979_v10, %v743_v60  ;;  %v792_v17 = vmul.f32 %v980_v39, %v744_v34  ;;  %v793_v40 = vmul.f32 %v981_v15, %v745_v63  ;;  %v794_v5 = vmul.f32 %v982_v50, %v746_v14 }
 0x26c   :  { %839 = vst [vmem:[#allocation5 + $0x100] sm:$0xff] %v791_v25 }
 0x26d   :  { %840 = vst [vmem:[#allocation5 + $0x108] sm:$0xff] %v792_v17 }
 0x26e   :  { %841 = vst [vmem:[#allocation5 + $0x110] sm:$0xff] %v793_v40 }
 0x26f   :  { %842 = vst [vmem:[#allocation5 + $0x118] sm:$0xff] %v794_v5 }
 0x275   :  { %v692_v33 = vpop.permute.xlu1 %691 }
 0x276   :  { %v709_v9 = vadd.f32 1.0, %v692_v33 }
 0x278   :  { %v751_v12 = vadd.f32 %v709_v9, %v1661_v35  ;;  %v752_v23 = vadd.f32 %v709_v9, %v1665_v38  ;;  %v753_v13 = vadd.f32 %v709_v9, %v1669_v16  ;;  %v754_v20 = vadd.f32 %v709_v9, %v1671_v31 }
 0x27a   :  { %v799_v29 = vmul.f32 %v983_v0, %v751_v12  ;;  %v800_v49 = vmul.f32 %v984_v44, %v752_v23  ;;  %v801_v52 = vmul.f32 %v985_v62, %v753_v13  ;;  %v802_v35 = vmul.f32 %v986_v54, %v754_v20 }
 0x27c   :  { %847 = vst [vmem:[#allocation5 + $0x140] sm:$0xff] %v799_v29 }
 0x27d   :  { %848 = vst [vmem:[#allocation5 + $0x148] sm:$0xff] %v800_v49 }
 0x27e   :  { %849 = vst [vmem:[#allocation5 + $0x150] sm:$0xff] %v801_v52 }
 0x27f   :  { %850 = vst [vmem:[#allocation5 + $0x158] sm:$0xff] %v802_v35 }
 0x280   :  { %867 = dma.vmem_to_hbm [thread:$0]  %s860_s30, 6144, %s862_s9, [#allocation4], %s1040_s26, %s1040_s26, %s1041_s27  }
 0x281   :  { %1037 = dma.done.wait [#allocation4], 6144  }
 0x282   :  { %1038 = vsyncadd [#allocation4], 4294961152 }
 0x283   :  { %872 = vsyncpa [#allocation3], 1 }
 0x284   :  { %873 = vsyncpa [#allocation4], 1 }

</bundles_post_ra>
